<compile_context>
chip_gen: v7x
topology: tpu7x:2x2x1
jax: 0.10.0
libtpu: 0.0.40
codegen_flags: <defaults>
</compile_context>

<pallas_src>
import functools

import jax
import jax.numpy as jnp
from jax import lax
from jax.experimental import pallas as pl
from jax.experimental.pallas import tpu as pltpu


def _round_up(x, m):
    return (x + m - 1) // m * m


# --------------------------------------------------------------------------
# Kernels
# --------------------------------------------------------------------------
def _linear_kernel_single(precision, x_ref, w_ref, b_ref, o_ref):
    """Whole-K kernel: x (tm, K), w (N, K) [PyTorch layout], b (1, N), o (tm, N)."""
    o_ref[...] = (
        lax.dot_general(
            x_ref[...], w_ref[...],
            dimension_numbers=(((1,), (1,)), ((), ())),   # x @ w.T, no w copy
            preferred_element_type=jnp.float32,
            precision=precision,
        )
        + b_ref[...]
    ).astype(o_ref.dtype)


def _linear_kernel_ktiled(precision, x_ref, w_ref, b_ref, o_ref):
    """K-tiled fallback: accumulate directly into the resident f32 o_ref."""
    k = pl.program_id(1)

    @pl.when(k == 0)
    def _():
        o_ref[...] = jnp.broadcast_to(b_ref[...], o_ref.shape)

    o_ref[...] += lax.dot_general(
        x_ref[...], w_ref[...],
        dimension_numbers=(((1,), (1,)), ((), ())),
        preferred_element_type=jnp.float32,
        precision=precision,
    )


# --------------------------------------------------------------------------
# Forward (jitted hot path — no parameter prep happens here)
# --------------------------------------------------------------------------
def _linear_forward(x, w, b, *, tm, tk, k_tiled, precision):
    x = x.astype(jnp.float32)
    M, K = x.shape
    N, Kp = w.shape

    # Per-call padding only when strictly required.
    if Kp != K:                                   # only in the K-tiled fallback
        x = jnp.pad(x, ((0, 0), (0, Kp - K)))
    if M <= tm:
        tile_m, Mp = M, M                         # full-dim block: no pad, no slice
    else:
        tile_m = tm
        Mp = _round_up(M, tm)
        if Mp != M:
            x = jnp.pad(x, ((0, Mp - M), (0, 0)))
    grid_m = Mp // tile_m

    if not k_tiled:
        grid = (grid_m,)
        kernel = functools.partial(_linear_kernel_single, precision)
        in_specs = [
            pl.BlockSpec((tile_m, Kp), lambda i: (i, 0)),   # activations
            pl.BlockSpec((N, Kp), lambda i: (0, 0)),        # weight, resident in VMEM
            pl.BlockSpec((1, N), lambda i: (0, 0)),         # bias
        ]
        out_specs = pl.BlockSpec((tile_m, N), lambda i: (i, 0))
        dim_sem = ("parallel",)
    else:
        grid = (grid_m, Kp // tk)                 # reduction axis last
        kernel = functools.partial(_linear_kernel_ktiled, precision)
        in_specs = [
            pl.BlockSpec((tile_m, tk), lambda i, k: (i, k)),
            pl.BlockSpec((N, tk), lambda i, k: (0, k)),
            pl.BlockSpec((1, N), lambda i, k: (0, 0)),
        ]
        out_specs = pl.BlockSpec((tile_m, N), lambda i, k: (i, 0))
        dim_sem = ("parallel", "arbitrary")

    out = pl.pallas_call(
        kernel,
        out_shape=jax.ShapeDtypeStruct((Mp, N), jnp.float32),
        grid_spec=pltpu.PrefetchScalarGridSpec(
            num_scalar_prefetch=0,
            grid=grid,
            in_specs=in_specs,
            out_specs=out_specs,
        ),
        compiler_params=pltpu.CompilerParams(
            dimension_semantics=dim_sem,
            # Explicit limit with headroom: above v5e's 16 MiB scoped default,
            # below v7x's 64 MiB physical VMEM.
            vmem_limit_bytes=48 * 1024 * 1024,
        ),
    )(x, w, b)

    return out if Mp == M else out[:M]


# --------------------------------------------------------------------------
# Module wrapper (parameter packing + tiling decision done once)
# --------------------------------------------------------------------------
class LinearClassifier:
    """Pallas-TPU port of the PyTorch module: y = x @ weight.T + bias."""

    def __init__(self, weight, bias, *, max_tile_m=256, max_tile_k=2048,
                 vmem_budget_bytes=24 * 1024 * 1024,
                 precision=jax.lax.Precision.HIGHEST):
        weight = jnp.asarray(weight, jnp.float32)          # (N, K), PyTorch layout
        bias = jnp.asarray(bias, jnp.float32)
        N, K = weight.shape
        self.num_classes, self.input_dim = N, K

        # One-time tiling decision: does the full-K working set (double-buffered
        # activations + resident weight + output tile) fit the VMEM budget?
        def fits(tm, tk):
            return 4 * (2 * tm * tk + 2 * N * tk + 2 * tm * N + 2 * N) <= vmem_budget_bytes

        tm = max_tile_m
        if fits(tm, K):
            tk, k_tiled = K, False
        else:
            k_tiled = True
            tk = max(128, max_tile_k)
            while tk > 128 and not fits(tm, tk):
                tk //= 2                                    # stays a multiple of 128

        # One-time parameter packing (hoisted out of the per-call path):
        Kp = K if not k_tiled else _round_up(K, tk)
        if Kp != K:
            weight = jnp.pad(weight, ((0, 0), (0, Kp - K)))  # zero K-pad: exact
        self._w = weight                                     # no transpose, no N pad
        self._b = bias.reshape(1, N)

        self._fwd = jax.jit(functools.partial(
            _linear_forward, tm=tm, tk=tk, k_tiled=k_tiled, precision=precision))

    def __call__(self, x):
        return self._fwd(x, self._w, self._b)


# --------------------------------------------------------------------------
if __name__ == "__main__":
    key = jax.random.PRNGKey(0)
    kx, kw, kb = jax.random.split(key, 3)

    # Small shapes consistent with the module: feature vector in, logits out.
    batch, input_dim, num_classes = 4, 512, 10

    bound = 1.0 / (input_dim ** 0.5)                 # nn.Linear default init range
    x = jax.random.normal(kx, (batch, input_dim), jnp.float32)
    weight = jax.random.uniform(kw, (num_classes, input_dim), jnp.float32,
                                minval=-bound, maxval=bound)
    bias = jax.random.uniform(kb, (num_classes,), jnp.float32,
                              minval=-bound, maxval=bound)

    ref = x @ weight.T + bias

    # Fast path: full-K resident, grid = (1,), single fused dot + bias.
    clf = LinearClassifier(weight, bias)
    y = clf(x)
    jax.block_until_ready(y)
    assert y.shape == (batch, num_classes)
    assert bool(jnp.all(jnp.isfinite(y)))
    assert jnp.allclose(y, ref, atol=1e-4, rtol=1e-4)

    # Also exercise the K-tiled fallback path (tiny VMEM budget forces it).
    clf_kt = LinearClassifier(weight, bias, vmem_budget_bytes=1 << 20)
    y_kt = clf_kt(x)
    jax.block_until_ready(y_kt)
    assert jnp.allclose(y_kt, ref, atol=1e-4, rtol=1e-4)

    print("KERNEL_OK")
</pallas_src>

<mosaic_0001>
module attributes {stable_mosaic.version = 11 : i64} {
  func.func @_linear_kernel_single(%arg0: i32, %arg1: memref<4x512xf32, #tpu.memory_space<vmem>>, %arg2: memref<10x512xf32, #tpu.memory_space<vmem>>, %arg3: memref<1x10xf32, #tpu.memory_space<vmem>>, %arg4: memref<4x10xf32, #tpu.memory_space<vmem>>) attributes {dimension_semantics = [#tpu.dimension_semantics<parallel>], iteration_bounds = array<i64: 1>, scalar_prefetch = 0 : i64, scratch_operands = 0 : i64, tpu.core_type = #tpu.core_type<tc>, window_params = [{transform_indices = @transform_0, window_bounds = array<i64: 4, 512>}, {pipeline_mode = #tpu.pipeline_mode<synchronous>, transform_indices = @transform_1, window_bounds = array<i64: 10, 512>}, {pipeline_mode = #tpu.pipeline_mode<synchronous>, transform_indices = @transform_2, window_bounds = array<i64: 1, 10>}, {transform_indices = @transform_3, window_bounds = array<i64: 4, 10>}]} {
    %c0 = arith.constant 0 : index
    %c0_0 = arith.constant 0 : index
    %0 = vector.load %arg1[%c0, %c0_0] : memref<4x512xf32, #tpu.memory_space<vmem>>, vector<4x512xf32>
    %c0_1 = arith.constant 0 : index
    %c0_2 = arith.constant 0 : index
    %1 = vector.load %arg2[%c0_1, %c0_2] : memref<10x512xf32, #tpu.memory_space<vmem>>, vector<10x512xf32>
    %cst = arith.constant dense<0.000000e+00> : vector<4x10xf32>
    %2 = tpu.matmul %0, %1, %cst {dimension_numbers = #tpu.dot_dimension_numbers<[1], [1], [0], [0], [0, 0, 1, 0], [], []>, precision = #tpu.contract_precision<fp32>} : vector<4x512xf32>, vector<10x512xf32>, vector<4x10xf32> -> vector<4x10xf32>
    %c0_3 = arith.constant 0 : index
    %c0_4 = arith.constant 0 : index
    %3 = vector.load %arg3[%c0_3, %c0_4] : memref<1x10xf32, #tpu.memory_space<vmem>>, vector<1x10xf32>
    %4 = vector.broadcast %3 : vector<1x10xf32> to vector<4x10xf32>
    %5 = arith.addf %2, %4 : vector<4x10xf32>
    %c0_5 = arith.constant 0 : index
    %c0_6 = arith.constant 0 : index
    %6 = vector.load %arg4[%c0_5, %c0_6] : memref<4x10xf32, #tpu.memory_space<vmem>>, vector<4x10xf32>
    tpu.vector_store %arg4[%c0_5, %c0_6], %5 {strides = array<i32>} : memref<4x10xf32, #tpu.memory_space<vmem>>, vector<4x10xf32>,
    return
  }
  func.func @transform_0(%arg0: i32) -> (i32, i32) {
    %c0_i32 = arith.constant 0 : i32
    %c0_i32_0 = arith.constant 0 : i32
    return %arg0, %c0_i32 : i32, i32
  }
  func.func @transform_1(%arg0: i32) -> (i32, i32) {
    %c0_i32 = arith.constant 0 : i32
    %c0_i32_0 = arith.constant 0 : i32
    %c0_i32_1 = arith.constant 0 : i32
    return %c0_i32, %c0_i32_0 : i32, i32
  }
  func.func @transform_2(%arg0: i32) -> (i32, i32) {
    %c0_i32 = arith.constant 0 : i32
    %c0_i32_0 = arith.constant 0 : i32
    %c0_i32_1 = arith.constant 0 : i32
    return %c0_i32, %c0_i32_0 : i32, i32
  }
  func.func @transform_3(%arg0: i32) -> (i32, i32) {
    %c0_i32 = arith.constant 0 : i32
    %c0_i32_0 = arith.constant 0 : i32
    return %arg0, %c0_i32 : i32, i32
  }
}

</mosaic_0001>

<bundles_post_ra>
// kernel: _linear_forward.1
= control target key start
LH: loop header
LB: loop body
LE: loop exit
PB: predicated region body
PF: predicated region fallthrough
CT: control target
= control target key end

     0   :  { %8 = vsyncpa [#allocation3], 0  ;;  %s1422_s0 = inlined_call_operand.hbm [shape: f32[4,512], index: 0, kind: input, shape index: {}]   ;;  %s1423_s1 = inlined_call_operand.hbm [shape: f32[10,512], index: 1, kind: input, shape index: {}]   ;;  %s1424_s2 = inlined_call_operand.vmem [shape: f32[1,10], index: 2, kind: input, shape index: {}]   ;;  %s1425_s3 = inlined_call_operand.hbm [shape: f32[4,10], index: 3, kind: output, shape index: {}]  }
   0x1   :  { %9 = vsyncpa [#allocation6], 0 }
   0x2   :  { %10 = vsyncpa [#allocation4], 0  ;;  %s1228_s12 = smov [#allocation2]   ;;  %s1229_s14 = smov [#allocation5]  }
   0x3   :  { %s17_s13 = sshll.u32 %s1228_s12, 4  ;;  %s26_s15 = sshll.u32 %s1229_s14, 4  ;;  %s18_s13 = int_to_ptr.vmem [resolvable:$true] %s17_s13  ;;  %s1253_s15 = int_to_ptr.vmem [resolvable:$true] %s26_s15 }
   0x4   :  { %s1156_s18 = scalar_lea.hbm %s1422_s0, 256 }
   0x5   :  { %p1157_p0 = scmp.ne.s32.totalorder %s1422_s0, %s1156_s18  ;;  %p1160_p1 = scmp.lt.u32.totalorder %s1156_s18, %s1422_s0 }
   0x7   :  { %p1162_p2 = pnand %p1160_p1, %p1157_p0 }
   0x9   :  { %1165 = shalt.err (!%p1162_p2)
}
   0xa   :  { %s1166_s23 = scalar_lea.vmem %s18_s13, 256  ;;  %p1171_p4 = scmp.lt.s32.totalorder %s18_s13, %s18_s13 }
   0xb   :  { %p1167_p3 = scmp.ne.s32.totalorder %s18_s13, %s1166_s23  ;;  %p1172_p5 = scmp.lt.s32.totalorder %s1166_s23, %s1166_s23 }
   0xd   :  { %p1173_p6 = por %p1172_p5, %p1171_p4 }
   0xf   :  { %p1174_p7 = pnand %p1173_p6, %p1167_p3 }
  0x11   :  { %1177 = shalt.err (!%p1174_p7)
}
  0x12   :  { %20 = dma.hbm_to_vmem [thread:$0]  %s1422_s0, 256, %s18_s13, [#allocation3]  }
  0x13   :  { %s1178_s28 = scalar_lea.hbm %s1423_s1, 1024 }
  0x14   :  { %p1179_p8 = scmp.ne.s32.totalorder %s1423_s1, %s1178_s28  ;;  %p1182_p9 = scmp.lt.u32.totalorder %s1178_s28, %s1423_s1 }
  0x16   :  { %p1184_p10 = pnand %p1182_p9, %p1179_p8 }
  0x18   :  { %1187 = shalt.err (!%p1184_p10)
}
  0x19   :  { %s1188_s6 = scalar_lea.vmem %s1253_s15, 1024  ;;  %p1193_p12 = scmp.lt.s32.totalorder %s1253_s15, %s1253_s15 }
  0x1a   :  { %p1189_p11 = scmp.ne.s32.totalorder %s1253_s15, %s1188_s6  ;;  %p1194_p13 = scmp.lt.s32.totalorder %s1188_s6, %s1188_s6 }
  0x1c   :  { %p1195_p0 = por %p1194_p13, %p1193_p12 }
  0x1e   :  { %p1196_p1 = pnand %p1195_p0, %p1189_p11 }
  0x20   :  { %1199 = shalt.err (!%p1196_p1)
}
  0x21   :  { %s1230_s0 = smov 512   ;;  %s1231_s7 = smov 32  }
  0x22   :  { %32 = dma.hbm_to_vmem [thread:$0]  %s1423_s1, 1024, %s1253_s15, [#allocation6], %s1230_s0, %s1230_s0, %s1231_s7  }
  0x23   :  { %1222 = dma.done.wait [#allocation3], 256  }
  0x24   :  { %1223 = vsyncadd [#allocation3], 4294967040 }
  0x25   :  { %1224 = dma.done.wait [#allocation6], 1024  }
  0x26   :  { %1225 = vsyncadd [#allocation6], 4294966272  ;;  %v44_v0 = vld [vmem:[#allocation5 + $0x8] sm:$0xff]  ;;  %v43_v2 = vld [vmem:[#allocation5] sm:$0xff]  ;;  %s1232_s11 = smov [#allocation7]   ;;  %vm1060_vm0 = vcmask 76800  }
  0x27   :  { %v48_v1 = vld [vmem:[#allocation5 + $0x28] sm:$0x3]  ;;  %v64_v3 = vand.u32 4294901760, %v44_v0  ;;  %v47_v5 = vld [vmem:[#allocation5 + $0x20] sm:$0x3]  ;;  %v66_v6 = vand.u32 4294901760, %v43_v2 }
  0x28   :  { %v68_v4 = vand.u32 4294901760, %v48_v1  ;;  %v46_v7 = vld [vmem:[#allocation5 + $0x18] sm:$0xff]  ;;  %v70_v8 = vand.u32 4294901760, %v47_v5  ;;  %v45_v11 = vld [vmem:[#allocation5 + $0x10] sm:$0xff]  ;;  %s1068_s12 = sshll.u32 %s1232_s11, 4  ;;  %s1069_s12 = int_to_ptr.vmem [resolvable:$true] %s1068_s12 }
  0x29   :  { %v50_v9 = vld [vmem:[#allocation5 + $0x38] sm:$0x3]  ;;  %v562_v10 = vand.u32 4294901760, %v46_v7  ;;  %v41_v12 = vld [vmem:[#allocation2] sm:$0xff]  ;;  %v1286_v14 = vsub.f32 %v44_v0, %v64_v3  ;;  %v1290_v16 = vsub.f32 %v43_v2, %v66_v6  ;;  %v564_v22 = vand.u32 4294901760, %v45_v11  ;;  %s1200_s13 = scalar_lea.vmem %s1069_s12, 64  ;;  %p1205_p3 = scmp.lt.s32.totalorder %s1069_s12, %s1069_s12 }
  0x2a   :  { %v1284_v13 = vpack.c.bf16 %v68_v4, %v64_v3  ;;  %v1288_v15 = vsub.f32 %v48_v1, %v68_v4  ;;  %v49_v17 = vld [vmem:[#allocation5 + $0x30] sm:$0x3]  ;;  %v1292_v18 = vpack.c.bf16 %v70_v8, %v66_v6  ;;  %v1294_v19 = vsub.f32 %v47_v5, %v70_v8  ;;  %v42_v26 = vld [vmem:[#allocation2 + $0x8] sm:$0xff]  ;;  %p1201_p2 = scmp.ne.s32.totalorder %s1069_s12, %s1200_s13  ;;  %p1206_p4 = scmp.lt.s32.totalorder %s1200_s13, %s1200_s13 }
  0x2b   :  { %v566_v20 = vand.u32 4294901760, %v50_v9  ;;  %v1296_v21 = vsub.f32 %v46_v7, %v562_v10  ;;  %v568_v23 = vand.u32 4294901760, %v49_v17  ;;  %v60_v24 = vcombine.high %v41_v12, %v41_v12 }
  0x2c   :  { %1080 = vmatprep.subr.bf16.mxu1 %v1284_v13  ;;  %v1299_v25 = vand.u32 4294901760, %v41_v12  ;;  %v150_v29 = vand.u32 4294901760, %v1286_v14  ;;  %v162_v30 = vand.u32 4294901760, %v1288_v15  ;;  %v1310_v32 = vsub.f32 %v45_v11, %v564_v22  ;;  %p1207_p5 = por %p1206_p4, %p1205_p3 }
  0x2d   :  { %1082 = vmatpush1.bf16.xpose.msra.mxu1 %v1292_v18  ;;  %v1302_v27 = vpack.c.bf16 %v566_v20, %v562_v10  ;;  %v1304_v28 = vsub.f32 %v50_v9, %v566_v20  ;;  %v1308_v31 = vpack.c.bf16 %v568_v23, %v564_v22  ;;  %v1312_v33 = vsub.f32 %v49_v17, %v568_v23 }
  0x2e   :  { %v1314_v34 = vand.u32 4294901760, %v60_v24  ;;  %v151_v35 = vsub.f32 %v1286_v14, %v150_v29  ;;  %v163_v36 = vsub.f32 %v1288_v15, %v162_v30  ;;  %v61_v37 = vcombine.high %v42_v26, %v42_v26  ;;  %p1208_p6 = pnand %p1207_p5, %p1201_p2 }
  0x2f   :  { %1104 = vmatprep.subr.bf16.mxu0 %v1302_v27  ;;  %v1323_v38 = vand.u32 4294901760, %v42_v26  ;;  %v1330_v40 = vsub.f32 %v41_v12, %v1299_v25  ;;  %v156_v41 = vand.u32 4294901760, %v1290_v16  ;;  %v168_v42 = vand.u32 4294901760, %v1294_v19 }
  0x30   :  { %1106 = vmatpush1.bf16.xpose.msra.mxu0 %v1308_v31  ;;  %v1327_v39 = vsub.f32 %v60_v24, %v1314_v34  ;;  %v152_v43 = vand.u32 4294901760, %v151_v35  ;;  %v164_v44 = vand.u32 4294901760, %v163_v36  ;;  %v1334_v45 = vand.u32 4294901760, %v61_v37 }
  0x31   :  { %v1337_v46 = vsub.f32 %v42_v26, %v1323_v38  ;;  %v140_v48 = vand.u32 4294901760, %v1330_v40  ;;  %v157_v49 = vsub.f32 %v1290_v16, %v156_v41  ;;  %v169_v50 = vsub.f32 %v1294_v19, %v168_v42 }
  0x32   :  { %v134_v47 = vand.u32 4294901760, %v1327_v39  ;;  %v1083_v51 = vpack.c.bf16 %v164_v44, %v152_v43  ;;  %v631_v52 = vsub.f32 %v61_v37, %v1334_v45  ;;  %v648_v54 = vand.u32 4294901760, %v1296_v21 }
  0x33   :  { %v638_v53 = vand.u32 4294901760, %v1337_v46  ;;  %v141_v56 = vsub.f32 %v1330_v40, %v140_v48  ;;  %v158_v57 = vand.u32 4294901760, %v157_v49  ;;  %v170_v58 = vand.u32 4294901760, %v169_v50 }
  0x34   :  { %v135_v55 = vsub.f32 %v1327_v39, %v134_v47  ;;  %1084 = vmatprep.subr.bf16.mxu1 %v1083_v51  ;;  %v632_v59 = vand.u32 4294901760, %v631_v52  ;;  %v649_v61 = vsub.f32 %v1296_v21, %v648_v54  ;;  %v660_v62 = vand.u32 4294901760, %v1304_v28 }
  0x35   :  { %v639_v60 = vsub.f32 %v1337_v46, %v638_v53  ;;  %v142_v0 = vand.u32 4294901760, %v141_v56  ;;  %v1085_v1 = vpack.c.bf16 %v170_v58, %v158_v57  ;;  %v654_v2 = vand.u32 4294901760, %v1310_v32 }
  0x36   :  { %v136_v63 = vand.u32 4294901760, %v135_v55  ;;  %v633_v3 = vsub.f32 %v631_v52, %v632_v59  ;;  %v650_v4 = vand.u32 4294901760, %v649_v61  ;;  %v661_v5 = vsub.f32 %v1304_v28, %v660_v62 }
  0x37   :  { %v640_v6 = vand.u32 4294901760, %v639_v60  ;;  %v655_v7 = vsub.f32 %v1310_v32, %v654_v2  ;;  %v666_v8 = vand.u32 4294901760, %v1312_v33  ;;  %v1087_v9 = vpack.c.bf16 %v1288_v15, %v1286_v14 }
  0x38   :  { %137 = vmatprep.mubr.f32.mxu1 %v136_v63  ;;  %v634_v10 = vand.u32 4294901760, %v633_v3  ;;  %v662_v11 = vand.u32 4294901760, %v661_v5  ;;  %v1111_v23 = vpack.c.bf16 %v1304_v28, %v1296_v21  ;;  %v1089_v26 = vpack.c.bf16 %v1294_v19, %v1290_v16 }
  0x39   :  { %143 = vmatmul.mubr.f32.vlgmr.msra.gmra.mrb[0].mxu1 %v142_v0  ;;  %v656_v12 = vand.u32 4294901760, %v655_v7  ;;  %v667_v17 = vsub.f32 %v1312_v33, %v666_v8  ;;  %v1113_v35 = vpack.c.bf16 %v1312_v33, %v1310_v32  ;;  %v1095_v21 = vpack.c.bf16 %v162_v30, %v150_v29 }
  0x3a   :  { %1086 = vmatpush1.bf16.xpose.msra.mxu1 %v1085_v1  ;;  %233 = vmatprep.mubr.f32.mxu1 %v1314_v34  ;;  %v1107_v20 = vpack.c.bf16 %v662_v11, %v650_v4  ;;  %v1119_v28 = vpack.c.bf16 %v660_v62, %v648_v54  ;;  %v1097_v32 = vpack.c.bf16 %v168_v42, %v156_v41 }
  0x3b   :  { %635 = vmatprep.mubr.f32.mxu0 %v634_v10  ;;  %1088 = vmatprep.subr.bf16.mxu1 %v1087_v9  ;;  %v668_v22 = vand.u32 4294901760, %v667_v17  ;;  %v1121_v14 = vpack.c.bf16 %v666_v8, %v654_v2 }
  0x3c   :  { %641 = vmatmul.mubr.f32.vlgmr.msra.gmra.mrb[0].mxu0 %v640_v6  ;;  %1108 = vmatprep.subr.bf16.mxu0 %v1107_v20 }
  0x3d   :  { %731 = vmatprep.mubr.f32.mxu0 %v1334_v45  ;;  %v1109_v24 = vpack.c.bf16 %v668_v22, %v656_v12 }
  0x3f   :  { %1110 = vmatpush1.bf16.xpose.msra.mxu0 %v1109_v24 }
  0x40   :  { %1112 = vmatprep.subr.bf16.mxu0 %v1111_v23 }
  0x41   :  { %235 = vmatmul.mubr.f32.vlgmr.msra.gmra.mrb[0].mxu1 %v1299_v25 }
  0x42   :  { %1090 = vmatpush1.bf16.xpose.msra.mxu1 %v1089_v26  ;;  %314 = vmatprep.mubr.f32.mxu1 %v1327_v39 }
  0x43   :  { %1092 = vmatprep.subr.bf16.mxu1 %v1284_v13 }
  0x46   :  { %733 = vmatmul.mubr.f32.vlgmr.msra.gmra.mrb[0].mxu0 %v1323_v38 }
  0x47   :  { %1114 = vmatpush1.bf16.xpose.msra.mxu0 %v1113_v35  ;;  %812 = vmatprep.mubr.f32.mxu0 %v631_v52 }
  0x48   :  { %1116 = vmatprep.subr.bf16.mxu0 %v1302_v27 }
  0x49   :  { %317 = vmatmul.mubr.f32.vlgmr.msra.gmra.mrb[0].mxu1 %v1330_v40 }
  0x4a   :  { %1094 = vmatpush1.bf16.xpose.msra.mxu1 %v1292_v18  ;;  %393 = vmatprep.mubr.f32.mxu1 %v134_v47 }
  0x4b   :  { %1096 = vmatprep.subr.bf16.mxu1 %v1095_v21 }
  0x4e   :  { %815 = vmatmul.mubr.f32.vlgmr.msra.gmra.mrb[0].mxu0 %v1337_v46 }
  0x4f   :  { %1118 = vmatpush1.bf16.xpose.msra.mxu0 %v1308_v31  ;;  %891 = vmatprep.mubr.f32.mxu0 %v632_v59 }
  0x50   :  { %1120 = vmatprep.subr.bf16.mxu0 %v1119_v28 }
  0x51   :  { %397 = vmatmul.mubr.f32.vlgmr.msra.gmra.mrb[0].mxu1 %v140_v48 }
  0x52   :  { %1098 = vmatpush1.bf16.xpose.msra.mxu1 %v1097_v32  ;;  %479 = vmatprep.mubr.f32.mxu1 %v1314_v34 }
  0x53   :  { %1100 = vmatprep.subr.bf16.mxu1 %v1284_v13  ;;  %v1078_v13 = vld [vmem:[%s1424_s2] ss:$0 sm:$0xff] }
  0x56   :  { %895 = vmatmul.mubr.f32.vlgmr.msra.gmra.mrb[0].mxu0 %v638_v53 }
  0x57   :  { %1122 = vmatpush1.bf16.xpose.msra.mxu0 %v1121_v14  ;;  %977 = vmatprep.mubr.f32.mxu0 %v1334_v45 }
  0x58   :  { %1124 = vmatprep.subr.bf16.mxu0 %v1302_v27 }
  0x59   :  { %481 = vmatmul.mubr.f32.vlgmr.msra.gmra.mrb[0].mxu1 %v1299_v25 }
  0x5a   :  { %1102 = vmatpush1.bf16.xpose.msra.mxu1 %v1292_v18  ;;  %555 = vmatprep.mubr.f32.mxu1 %v1314_v34 }
  0x5e   :  { %979 = vmatmul.mubr.f32.vlgmr.msra.gmra.mrb[0].mxu0 %v1323_v38 }
  0x5f   :  { %1126 = vmatpush1.bf16.xpose.msra.mxu0 %v1308_v31  ;;  %1053 = vmatprep.mubr.f32.mxu0 %v1334_v45 }
  0x61   :  { %557 = vmatmul.mubr.f32.vlgmr.msra.gmra.mrb[0].mxu1 %v1299_v25 }
  0x66   :  { %1055 = vmatmul.mubr.f32.vlgmr.msra.gmra.mrb[0].mxu0 %v1323_v38 }
 0x134   :  { %v558_v15 = vpop.f32.mrb[0].mxu1 }
 0x135   :  { %v560_v16 = vpop.f32.mrb[1].mxu1  ;;  %v1127_v19 = vadd.f32 %v1078_v13, %v558_v15 }
 0x139   :  { %v1056_v18 = vpop.f32.mrb[0].mxu0 }
 0x13a   :  { %v1128_v27 = vadd.f32 %v1127_v19, %v1056_v18  ;;  %v1058_v29 = vpop.f32.mrb[1].mxu0 }
 0x13c   :  { %1061 = vst.msk [vmem:[#allocation7] sm:$0xf] %vm1060_vm0, %v1128_v27 }
 0x13d   :  { %1211 = shalt.err (!%p1208_p6)
}
 0x13e   :  { %s1212_s15 = scalar_lea.hbm %s1425_s3, 64 }
 0x13f   :  { %p1213_p7 = scmp.ne.s32.totalorder %s1425_s3, %s1212_s15  ;;  %p1216_p8 = scmp.lt.u32.totalorder %s1212_s15, %s1425_s3 }
 0x141   :  { %p1218_p9 = pnand %p1216_p8, %p1213_p7 }
 0x143   :  { %1221 = shalt.err (!%p1218_p9)
}
 0x144   :  { %1071 = dma.vmem_to_hbm [thread:$0]  %s1069_s12, 64, %s1425_s3, [#allocation4]  }
 0x145   :  { %1226 = dma.done.wait [#allocation4], 64  }
 0x146   :  { %1227 = vsyncadd [#allocation4], 4294967232 }
 0x147   :  { %1075 = vsyncpa [#allocation3], 1 }
 0x148   :  { %1076 = vsyncpa [#allocation6], 1 }
 0x149   :  { %1077 = vsyncpa [#allocation4], 1 }

</bundles_post_ra>
